<compile_context>
chip_gen: v6e
topology: v6e:2x2x1
jax: 0.10.0
libtpu: 0.0.40
codegen_flags: <defaults>
</compile_context>

<pallas_src>
import jax
import jax.numpy as jnp
from jax.experimental import pallas as pl
from jax.experimental.pallas import tpu as pltpu

LANES = 128
SUBLANES = 8
DEFAULT_BLOCK_ROWS = 1024  # (1024,128) f32 block = 512 KiB; fits every VMEM budget


def _smooth_l1_kernel(x_ref, y_ref, out_ref, acc_ref):
    """SmoothL1 elementwise + lane-parallel running sum.

    Grid = (parts, blocks_per_part).  Axis 1 is the reduction ("arbitrary");
    axis 0 is "parallel" (one independent partial-sum slab per partition).
    """
    i = pl.program_id(1)

    @pl.when(i == 0)
    def _():
        acc_ref[...] = jnp.zeros_like(acc_ref)

    x = x_ref[...].astype(jnp.float32)
    y = y_ref[...].astype(jnp.float32)
    diff = x - y
    adiff = jnp.abs(diff)
    # beta = 1.0 (PyTorch default): 0.5*d^2 if |d| < 1 else |d| - 0.5
    loss = jnp.where(adiff < 1.0, 0.5 * diff * diff, adiff - 0.5)

    # Keep the accumulator vreg-shaped: sum groups of 8 rows onto the (8,128)
    # accumulator (pure VPU adds, no cross-lane XLU work per step).
    acc_ref[...] += loss.reshape(-1, SUBLANES, LANES).sum(axis=0)

    @pl.when(i == pl.num_programs(1) - 1)
    def _():
        out_ref[...] = acc_ref[...].reshape(out_ref.shape)


def smooth_l1_loss(inp, target, *, block_rows=DEFAULT_BLOCK_ROWS):
    assert inp.shape == target.shape
    n_elems = inp.size

    x = inp.reshape(-1)
    y = target.reshape(-1)

    # Row / block geometry (all static Python ints).
    rows_needed = pl.cdiv(n_elems, LANES)
    rows8 = pl.cdiv(rows_needed, SUBLANES) * SUBLANES
    block_rows = min(block_rows, rows8)              # multiple of 8 by construction
    nblk = pl.cdiv(rows8, block_rows)
    parts = 2 if (nblk % 2 == 0 and nblk >= 2) else 1   # 2-TC split on v7x when even
    blocks_per_part = nblk // parts
    rows = nblk * block_rows
    padded = rows * LANES

    # Pad only if needed; padded positions are 0 in both arrays -> loss = 0.
    if padded != n_elems:
        pad = padded - n_elems
        x = jnp.concatenate([x, jnp.zeros((pad,), x.dtype)])
        y = jnp.concatenate([y, jnp.zeros((pad,), y.dtype)])

    x2 = x.reshape(rows, LANES)
    y2 = y.reshape(rows, LANES)

    in_map = lambda p, i, bpp=blocks_per_part: (p * bpp + i, 0)

    partials = pl.pallas_call(
        _smooth_l1_kernel,
        out_shape=jax.ShapeDtypeStruct((parts, SUBLANES, LANES), jnp.float32),
        grid_spec=pltpu.PrefetchScalarGridSpec(
            num_scalar_prefetch=0,
            grid=(parts, blocks_per_part),
            in_specs=[
                pl.BlockSpec((block_rows, LANES), in_map),
                pl.BlockSpec((block_rows, LANES), in_map),
            ],
            out_specs=pl.BlockSpec((1, SUBLANES, LANES), lambda p, i: (p, 0, 0)),
            scratch_shapes=[pltpu.VMEM((SUBLANES, LANES), jnp.float32)],
        ),
        compiler_params=pltpu.CompilerParams(
            dimension_semantics=("parallel", "arbitrary"),
        ),
    )(x2, y2)

    # Final (tiny) cross-lane reduce + mean over the true element count.
    return (jnp.sum(partials) / n_elems).astype(jnp.float32)


def _ref_smooth_l1(x, t):
    d = x.astype(jnp.float32) - t.astype(jnp.float32)
    ad = jnp.abs(d)
    return jnp.mean(jnp.where(ad < 1.0, 0.5 * d * d, ad - 0.5))


if __name__ == "__main__":
    key = jax.random.PRNGKey(0)
    k1, k2, k3, k4 = jax.random.split(key, 4)

    # NCHW, small shapes: batch=2, channels=4, spatial=16x16 (lane-aligned)
    x = jax.random.normal(k1, (2, 4, 16, 16), dtype=jnp.float32)
    t = jax.random.normal(k2, (2, 4, 16, 16), dtype=jnp.float32)
    loss = smooth_l1_loss(x, t)
    jax.block_until_ready(loss)
    ref = _ref_smooth_l1(x, t)
    assert jnp.allclose(loss, ref, atol=1e-5, rtol=1e-5), (loss, ref)

    # Ragged size (exercises the tail-padding path)
    x2 = jax.random.normal(k3, (3, 5, 7, 11), dtype=jnp.float32)
    t2 = jax.random.normal(k4, (3, 5, 7, 11), dtype=jnp.float32)
    loss2 = smooth_l1_loss(x2, t2)
    jax.block_until_ready(loss2)
    ref2 = _ref_smooth_l1(x2, t2)
    assert jnp.allclose(loss2, ref2, atol=1e-5, rtol=1e-5), (loss2, ref2)

    print("KERNEL_OK")
</pallas_src>

<mosaic_0001>
module attributes {stable_mosaic.version = 11 : i64} {
  func.func @_smooth_l1_kernel(%arg0: i32, %arg1: i32, %arg2: memref<16x128xf32, #tpu.memory_space<vmem>>, %arg3: memref<16x128xf32, #tpu.memory_space<vmem>>, %arg4: memref<1x8x128xf32, #tpu.memory_space<vmem>>, %arg5: memref<8x128xf32, #tpu.memory_space<vmem>>) attributes {dimension_semantics = [#tpu.dimension_semantics<parallel>, #tpu.dimension_semantics<arbitrary>], iteration_bounds = array<i64: 1, 1>, scalar_prefetch = 0 : i64, scratch_operands = 1 : i64, tpu.core_type = #tpu.core_type<tc>, window_params = [{transform_indices = @transform_0, window_bounds = array<i64: 16, 128>}, {transform_indices = @transform_1, window_bounds = array<i64: 16, 128>}, {transform_indices = @transform_2, window_bounds = array<i64: 1, 8, 128>}]} {
    %c0_i32 = arith.constant 0 : i32
    %0 = arith.cmpi eq, %arg1, %c0_i32 : i32
    %1 = arith.extui %0 : i1 to i32
    %c0_i32_0 = arith.constant 0 : i32
    %2 = arith.cmpi ne, %1, %c0_i32_0 : i32
    scf.if %2 {
      %cst_13 = arith.constant 0.000000e+00 : f32
      %23 = vector.broadcast %cst_13 : f32 to vector<8x128xf32>
      %c0_14 = arith.constant 0 : index
      %c0_15 = arith.constant 0 : index
      %24 = vector.load %arg5[%c0_14, %c0_15] : memref<8x128xf32, #tpu.memory_space<vmem>>, vector<8x128xf32>
      tpu.vector_store %arg5[%c0_14, %c0_15], %23 {strides = array<i32>} : memref<8x128xf32, #tpu.memory_space<vmem>>, vector<8x128xf32>,
    } else {
    }
    %c0 = arith.constant 0 : index
    %c0_1 = arith.constant 0 : index
    %3 = vector.load %arg2[%c0, %c0_1] : memref<16x128xf32, #tpu.memory_space<vmem>>, vector<16x128xf32>
    %c0_2 = arith.constant 0 : index
    %c0_3 = arith.constant 0 : index
    %4 = vector.load %arg3[%c0_2, %c0_3] : memref<16x128xf32, #tpu.memory_space<vmem>>, vector<16x128xf32>
    %5 = arith.subf %3, %4 : vector<16x128xf32>
    %6 = math.absf %5 : vector<16x128xf32>
    %cst = arith.constant 1.000000e+00 : f32
    %7 = vector.broadcast %cst : f32 to vector<16x128xf32>
    %8 = arith.cmpf olt, %6, %7 : vector<16x128xf32>
    %cst_4 = arith.constant 5.000000e-01 : f32
    %9 = vector.broadcast %cst_4 : f32 to vector<16x128xf32>
    %10 = arith.mulf %9, %5 : vector<16x128xf32>
    %11 = arith.mulf %10, %5 : vector<16x128xf32>
    %cst_5 = arith.constant 5.000000e-01 : f32
    %12 = vector.broadcast %cst_5 : f32 to vector<16x128xf32>
    %13 = arith.subf %6, %12 : vector<16x128xf32>
    %14 = arith.select %8, %11, %13 : vector<16x128xi1>, vector<16x128xf32>
    %c0_6 = arith.constant 0 : index
    %c0_7 = arith.constant 0 : index
    %15 = vector.load %arg5[%c0_6, %c0_7] : memref<8x128xf32, #tpu.memory_space<vmem>>, vector<8x128xf32>
    %16 = vector.shape_cast %14 : vector<16x128xf32> to vector<2x8x128xf32>
    %cst_8 = arith.constant dense<0.000000e+00> : vector<8x128xf32>
    %17 = vector.multi_reduction <add>, %16, %cst_8 [0] : vector<2x8x128xf32> to vector<8x128xf32>
    %18 = arith.addf %15, %17 : vector<8x128xf32>
    %c0_9 = arith.constant 0 : index
    %c0_10 = arith.constant 0 : index
    %19 = vector.load %arg5[%c0_9, %c0_10] : memref<8x128xf32, #tpu.memory_space<vmem>>, vector<8x128xf32>
    tpu.vector_store %arg5[%c0_9, %c0_10], %18 {strides = array<i32>} : memref<8x128xf32, #tpu.memory_space<vmem>>, vector<8x128xf32>,
    %c0_i32_11 = arith.constant 0 : i32
    %20 = arith.cmpi eq, %arg1, %c0_i32_11 : i32
    %21 = arith.extui %20 : i1 to i32
    %c0_i32_12 = arith.constant 0 : i32
    %22 = arith.cmpi ne, %21, %c0_i32_12 : i32
    scf.if %22 {
      %c0_13 = arith.constant 0 : index
      %c0_14 = arith.constant 0 : index
      %23 = vector.load %arg5[%c0_13, %c0_14] : memref<8x128xf32, #tpu.memory_space<vmem>>, vector<8x128xf32>
      %24 = vector.shape_cast %23 : vector<8x128xf32> to vector<1x8x128xf32>
      %c0_15 = arith.constant 0 : index
      %c0_16 = arith.constant 0 : index
      %c0_17 = arith.constant 0 : index
      %25 = vector.load %arg4[%c0_15, %c0_16, %c0_17] : memref<1x8x128xf32, #tpu.memory_space<vmem>>, vector<1x8x128xf32>
      tpu.vector_store %arg4[%c0_15, %c0_16, %c0_17], %24 {strides = array<i32>} : memref<1x8x128xf32, #tpu.memory_space<vmem>>, vector<1x8x128xf32>,
    } else {
    }
    return
  }
  func.func @transform_0(%arg0: i32, %arg1: i32) -> (i32, i32) {
    %c1_i32 = arith.constant 1 : i32
    %0 = arith.muli %arg0, %c1_i32 : i32
    %1 = arith.addi %0, %arg1 : i32
    %c0_i32 = arith.constant 0 : i32
    %c0_i32_0 = arith.constant 0 : i32
    return %1, %c0_i32 : i32, i32
  }
  func.func @transform_1(%arg0: i32, %arg1: i32) -> (i32, i32) {
    %c1_i32 = arith.constant 1 : i32
    %0 = arith.muli %arg0, %c1_i32 : i32
    %1 = arith.addi %0, %arg1 : i32
    %c0_i32 = arith.constant 0 : i32
    %c0_i32_0 = arith.constant 0 : i32
    return %1, %c0_i32 : i32, i32
  }
  func.func @transform_2(%arg0: i32, %arg1: i32) -> (i32, i32, i32) {
    %c0_i32 = arith.constant 0 : i32
    %c0_i32_0 = arith.constant 0 : i32
    %c0_i32_1 = arith.constant 0 : i32
    return %arg0, %c0_i32, %c0_i32_0 : i32, i32, i32
  }
}

</mosaic_0001>

<bundles_post_ra>
// kernel: tpu_custom_call.1
= control target key start
LH: loop header
LB: loop body
LE: loop exit
PB: predicated region body
PF: predicated region fallthrough
CT: control target
= control target key end

     0   :  { %7 = vsyncpa [#allocation4], 0  ;;  %s202_s0 = inlined_call_operand.hbm [shape: f32[16,128], index: 0, kind: input, shape index: {}]   ;;  %s203_s1 = inlined_call_operand.hbm [shape: f32[16,128], index: 1, kind: input, shape index: {}]   ;;  %s204_s2 = inlined_call_operand.hbm [shape: f32[1,8,128], index: 2, kind: output, shape index: {}]  }
   0x1   :  { %8 = vsyncpa [#allocation7], 0 }
   0x2   :  { %9 = vsyncpa [#allocation5], 0  ;;  %s173_s9 = smov [#allocation3]  }
   0x3   :  { %s19_s10 = sshll.u32 %s173_s9, 4  ;;  %s20_s10 = int_to_ptr.vmem [resolvable:$true] %s19_s10 }
   0x4   :  { %s115_s11 = scalar_lea.vmem %s20_s10, 256  ;;  %p120_p1 = scmp.lt.s32.totalorder %s20_s10, %s20_s10 }
   0x5   :  { %p116_p0 = scmp.ne.s32.totalorder %s20_s10, %s115_s11  ;;  %p121_p2 = scmp.lt.s32.totalorder %s115_s11, %s115_s11 }
   0x7   :  { %p122_p3 = por %p121_p2, %p120_p1 }
   0x9   :  { %p123_p4 = pnand %p122_p3, %p116_p0 }
   0xb   :  { %126 = shalt.err (!%p123_p4)
}
   0xc   :  { %s174_s12 = smov 128   ;;  %s175_s13 = smov 8  }
   0xd   :  { %25 = dma.hbm_to_vmem [thread:$0]  %s202_s0, 256, %s20_s10, [#allocation4], %s174_s12, %s174_s12, %s175_s13  }
   0xe   :  { %s176_s16 = smov [#allocation6]  }
   0xf   :  { %s35_s17 = sshll.u32 %s176_s16, 4  ;;  %s36_s17 = int_to_ptr.vmem [resolvable:$true] %s35_s17 }
  0x10   :  { %s135_s18 = scalar_lea.vmem %s36_s17, 256  ;;  %p140_p6 = scmp.lt.s32.totalorder %s36_s17, %s36_s17 }
  0x11   :  { %p136_p5 = scmp.ne.s32.totalorder %s36_s17, %s135_s18  ;;  %p141_p7 = scmp.lt.s32.totalorder %s135_s18, %s135_s18 }
  0x13   :  { %p142_p8 = por %p141_p7, %p140_p6 }
  0x15   :  { %p143_p9 = pnand %p142_p8, %p136_p5 }
  0x17   :  { %146 = shalt.err (!%p143_p9)
}
  0x18   :  { %41 = dma.hbm_to_vmem [thread:$0]  %s203_s1, 256, %s36_s17, [#allocation7], %s174_s12, %s174_s12, %s175_s13  }
  0x19   :  { %167 = dma.done.wait [#allocation4], 256  }
  0x1a   :  { %168 = vsyncadd [#allocation4], 4294967040 }
  0x1b   :  { %169 = dma.done.wait [#allocation7], 256  }
  0x1c   :  { %170 = vsyncadd [#allocation7], 4294967040  ;;  %v57_v0 = vld [vmem:[#allocation3] sm:$0xff]  ;;  %v58_v1 = vld [vmem:[#allocation3 + $0x8] sm:$0xff]  ;;  %s177_s0 = smov [#allocation8]  }
  0x1d   :  { %v59_v2 = vld [vmem:[#allocation6] sm:$0xff]  ;;  %v60_v3 = vld [vmem:[#allocation6 + $0x8] sm:$0xff]  ;;  %s90_s1 = sshll.u32 %s177_s0, 4  ;;  %s91_s1 = int_to_ptr.vmem [resolvable:$true] %s90_s1 }
  0x1e   :  { %v61_v4 = vsub.f32 %v57_v0, %v59_v2  ;;  %v62_v5 = vsub.f32 %v58_v1, %v60_v3  ;;  %s147_s21 = scalar_lea.vmem %s91_s1, 128  ;;  %p152_p11 = scmp.lt.s32.totalorder %s91_s1, %s91_s1 }
  0x1f   :  { %p148_p10 = scmp.ne.s32.totalorder %s91_s1, %s147_s21  ;;  %p153_p12 = scmp.lt.s32.totalorder %s147_s21, %s147_s21 }
  0x20   :  { %v63_v6 = vand.u32 2147483647, %v61_v4  ;;  %v67_v7 = vmul.f32 0.5, %v61_v4  ;;  %v64_v8 = vand.u32 2147483647, %v62_v5  ;;  %v68_v9 = vmul.f32 0.5, %v62_v5 }
  0x21   :  { %p154_p13 = por %p153_p12, %p152_p11 }
  0x22   :  { %vm65_vm0 = vcmp.lt.f32.partialorder %v63_v6, 1.0  ;;  %v69_v10 = vmul.f32 %v67_v7, %v61_v4  ;;  %v100_v11 = vadd.f32 -0.5, %v63_v6  ;;  %vm66_vm1 = vcmp.lt.f32.partialorder %v64_v8, 1.0 }
  0x23   :  { %v70_v12 = vmul.f32 %v68_v9, %v62_v5  ;;  %v101_v13 = vadd.f32 -0.5, %v64_v8  ;;  %p155_p0 = pnand %p154_p13, %p148_p10 }
  0x24   :  { %v73_v14 = vsel %vm65_vm0, %v69_v10, %v100_v11 }
  0x25   :  { %v74_v15 = vsel %vm66_vm1, %v70_v12, %v101_v13 }
  0x26   :  { %v76_v16 = vadd.f32 %v74_v15, %v73_v14 }
  0x28   :  { %83 = vst [vmem:[#allocation8] sm:$0xff] %v76_v16 }
  0x29   :  { %158 = shalt.err (!%p155_p0)
}
  0x2a   :  { %93 = dma.vmem_to_hbm [thread:$0]  %s91_s1, 128, %s204_s2, [#allocation5]  }
  0x2b   :  { %171 = dma.done.wait [#allocation5], 128  }
  0x2c   :  { %172 = vsyncadd [#allocation5], 4294967168 }
  0x2d   :  { %97 = vsyncpa [#allocation4], 1 }
  0x2e   :  { %98 = vsyncpa [#allocation7], 1 }
  0x2f   :  { %99 = vsyncpa [#allocation5], 1 }

</bundles_post_ra>
